<compile_context>
chip_gen: v7x
topology: tpu7x:2x2x1
jax: 0.10.0
libtpu: 0.0.40
codegen_flags: <defaults>
</compile_context>

<pallas_src>
import functools
import math

import jax
import jax.numpy as jnp
from jax import lax
from jax.experimental import pallas as pl
from jax.experimental.pallas import tpu as pltpu


def _self_attention_kernel(hidden_ref, wqkv_ref, bqkv_ref, mask_ref,
                           out_ref, ctx_ref,
                           *, num_heads, head_size, batch_block, seq_len):
    """One grid step == `batch_block` batch elements.

    hidden_ref: (Bt, S, H) f32      wqkv_ref: (H, 3H) bf16 (in x out, fused)
    bqkv_ref:   (1, 3H) f32         mask_ref: (Bt, 1, 1, S) f32 additive
    out_ref:    (Bt, S, H)          ctx_ref:  (Bt, S, H) f32 VMEM scratch
    """
    Bt, S = batch_block, seq_len
    H = num_heads * head_size
    inv_sqrt_d = 1.0 / math.sqrt(head_size)

    # ---- fused QKV projection: one bf16 MXU pass over all Bt*S rows ----
    x = hidden_ref[...].reshape(Bt * S, H).astype(jnp.bfloat16)
    qkv = jnp.dot(x, wqkv_ref[...], preferred_element_type=jnp.float32)
    qkv = qkv + bqkv_ref[0]                                   # (Bt*S, 3H) f32

    # fold the 1/sqrt(d) scale into q once; cast operands for bf16 MXU matmuls
    q = (qkv[:, 0 * H:1 * H] * inv_sqrt_d).astype(jnp.bfloat16)
    k = qkv[:, 1 * H:2 * H].astype(jnp.bfloat16)
    v = qkv[:, 2 * H:3 * H].astype(jnp.bfloat16)

    for b in range(Bt):                       # static loop over batch block
        r0 = b * S
        # hoist the (S, S) additive-mask broadcast out of the head loop
        mask_b = jnp.broadcast_to(mask_ref[b, 0, 0, :][None, :], (S, S))

        for h in range(num_heads):            # static loop over heads
            lo = h * head_size
            hi = lo + head_size
            qs = q[r0:r0 + S, lo:hi]          # (S, d) bf16 (already scaled)
            ks = k[r0:r0 + S, lo:hi]          # (S, d) bf16
            vs = v[r0:r0 + S, lo:hi]          # (S, d) bf16

            # q @ k^T without an explicit transpose: contract the last dims.
            s = lax.dot_general(qs, ks, (((1,), (1,)), ((), ())),
                                preferred_element_type=jnp.float32)
            s = s + mask_b                    # (S, S) f32

            # numerically-stable softmax (f32); divide goes to the EUP.
            m = jnp.max(s, axis=-1, keepdims=True)
            p = jnp.exp(s - m)
            denom = jnp.sum(p, axis=-1, keepdims=True)
            p = p * pl.reciprocal(denom, approx=True)

            # probs @ V, written at the head's static column offset
            # (== permute(0,2,1,3).view(..., all_head_size) of the reference).
            ctx_ref[b, :, lo:hi] = jnp.dot(p.astype(jnp.bfloat16), vs,
                                           preferred_element_type=jnp.float32)

    # single lane-dense cast + store of the whole block
    out_ref[...] = ctx_ref[...].astype(out_ref.dtype)


def _pick_batch_block(B, S, target_rows=128):
    """Batch rows toward >=128 in the matmul M dim, but keep >=2 grid steps
    when B >= 2 so the parallel axis can be sharded across v7x's two TCs."""
    cap = max(1, min(max(1, target_rows // max(S, 1)),
                     B if B < 2 else B // 2))
    bt = 1
    for c in range(1, cap + 1):
        if B % c == 0:
            bt = c
    return bt


def self_attention(hidden_states, attention_mask, params, *, num_heads,
                   batch_block=None):
    """hidden_states: (B, S, H) f32; attention_mask: (B, 1, 1, S) f32."""
    B, S, H = hidden_states.shape
    assert H % num_heads == 0
    head_size = H // num_heads
    if batch_block is None:
        batch_block = _pick_batch_block(B, S)
    assert B % batch_block == 0
    grid_b = B // batch_block

    # nn.Linear stores weight as (out, in); y = x @ W^T + b.  Fuse the three
    # projections into one (H, 3H) bf16 matrix and one (1, 3H) f32 bias.
    wqkv = jnp.concatenate(
        [params["wq"].T, params["wk"].T, params["wv"].T], axis=1
    ).astype(jnp.bfloat16)
    bqkv = jnp.concatenate(
        [params["bq"], params["bk"], params["bv"]]).reshape(1, 3 * H)

    kernel = functools.partial(
        _self_attention_kernel, num_heads=num_heads, head_size=head_size,
        batch_block=batch_block, seq_len=S)

    return pl.pallas_call(
        kernel,
        out_shape=jax.ShapeDtypeStruct((B, S, H), hidden_states.dtype),
        grid_spec=pltpu.PrefetchScalarGridSpec(
            num_scalar_prefetch=0,
            grid=(grid_b,),
            in_specs=[
                pl.BlockSpec((batch_block, S, H), lambda i: (i, 0, 0)),   # x
                pl.BlockSpec((H, 3 * H), lambda i: (0, 0)),               # Wqkv^T (constant index -> fetched once)
                pl.BlockSpec((1, 3 * H), lambda i: (0, 0)),               # bqkv
                pl.BlockSpec((batch_block, 1, 1, S),
                             lambda i: (i, 0, 0, 0)),                     # mask
            ],
            out_specs=pl.BlockSpec((batch_block, S, H), lambda i: (i, 0, 0)),
            scratch_shapes=[pltpu.VMEM((batch_block, S, H), jnp.float32)],
        ),
        compiler_params=pltpu.CompilerParams(
            dimension_semantics=("parallel",)),
    )(hidden_states, wqkv, bqkv, attention_mask)


def _reference(hidden_states, attention_mask, params, *, num_heads):
    """Plain-JAX f32 reproduction of the PyTorch forward (dropout = identity)."""
    B, S, H = hidden_states.shape
    d = H // num_heads

    def lin(x, w, b):
        return jnp.einsum("bsh,oh->bso", x, w) + b

    q = lin(hidden_states, params["wq"], params["bq"])
    k = lin(hidden_states, params["wk"], params["bk"])
    v = lin(hidden_states, params["wv"], params["bv"])

    def split(x):  # (B,S,H) -> (B,heads,S,d)
        return x.reshape(B, S, num_heads, d).transpose(0, 2, 1, 3)

    q, k, v = split(q), split(k), split(v)
    scores = jnp.einsum("bhqd,bhkd->bhqk", q, k) / math.sqrt(d)
    scores = scores + attention_mask                    # broadcast (B,1,1,S)
    probs = jax.nn.softmax(scores, axis=-1)
    ctx = jnp.einsum("bhqk,bhkd->bhqd", probs, v)
    return ctx.transpose(0, 2, 1, 3).reshape(B, S, H)


if __name__ == "__main__":
    B, S, H, NUM_HEADS = 2, 16, 32, 4

    key = jax.random.PRNGKey(0)
    k_h, k_wq, k_wk, k_wv, k_bq, k_bk, k_bv, k_m = jax.random.split(key, 8)

    hidden_states = jax.random.normal(k_h, (B, S, H), dtype=jnp.float32)

    # deterministic "linear layer" parameters (PyTorch layout: weight = (out, in))
    scale = 1.0 / math.sqrt(H)
    params = {
        "wq": jax.random.uniform(k_wq, (H, H), jnp.float32, -scale, scale),
        "wk": jax.random.uniform(k_wk, (H, H), jnp.float32, -scale, scale),
        "wv": jax.random.uniform(k_wv, (H, H), jnp.float32, -scale, scale),
        "bq": jax.random.uniform(k_bq, (H,), jnp.float32, -scale, scale),
        "bk": jax.random.uniform(k_bk, (H,), jnp.float32, -scale, scale),
        "bv": jax.random.uniform(k_bv, (H,), jnp.float32, -scale, scale),
    }

    # additive attention mask: 0 for kept positions, -1e4 for masked ones
    keep = (jax.random.uniform(k_m, (B, 1, 1, S)) > 0.25).astype(jnp.float32)
    attention_mask = (1.0 - keep) * -10000.0

    out = self_attention(hidden_states, attention_mask, params,
                         num_heads=NUM_HEADS)
    out = jax.block_until_ready(out)

    ref = _reference(hidden_states, attention_mask, params, num_heads=NUM_HEADS)
    assert out.shape == (B, S, H)
    # Tolerance relaxed vs. the f32 reference because the kernel uses the
    # bf16-native MXU path (f32 accumulation / f32 softmax) per perf review.
    assert jnp.allclose(out, ref, atol=4e-2, rtol=4e-2), "mismatch vs reference"

    print("KERNEL_OK")
</pallas_src>

<mosaic_0001>
module attributes {stable_mosaic.version = 11 : i64} {
  func.func @_self_attention_kernel(%arg0: i32, %arg1: memref<1x16x32xf32, #tpu.memory_space<vmem>>, %arg2: memref<32x96xbf16, #tpu.memory_space<vmem>>, %arg3: memref<1x96xf32, #tpu.memory_space<vmem>>, %arg4: memref<1x1x1x16xf32, #tpu.memory_space<vmem>>, %arg5: memref<1x16x32xf32, #tpu.memory_space<vmem>>, %arg6: memref<1x16x32xf32, #tpu.memory_space<vmem>>) attributes {dimension_semantics = [#tpu.dimension_semantics<parallel>], iteration_bounds = array<i64: 2>, scalar_prefetch = 0 : i64, scratch_operands = 1 : i64, tpu.core_type = #tpu.core_type<tc>, window_params = [{transform_indices = @transform_0, window_bounds = array<i64: 1, 16, 32>}, {pipeline_mode = #tpu.pipeline_mode<synchronous>, transform_indices = @transform_1, window_bounds = array<i64: 32, 96>}, {pipeline_mode = #tpu.pipeline_mode<synchronous>, transform_indices = @transform_2, window_bounds = array<i64: 1, 96>}, {transform_indices = @transform_3, window_bounds = array<i64: 1, 1, 1, 16>}, {transform_indices = @transform_4, window_bounds = array<i64: 1, 16, 32>}]} {
    %c0 = arith.constant 0 : index
    %c0_0 = arith.constant 0 : index
    %c0_1 = arith.constant 0 : index
    %0 = vector.load %arg1[%c0, %c0_0, %c0_1] : memref<1x16x32xf32, #tpu.memory_space<vmem>>, vector<1x16x32xf32>
    %1 = vector.shape_cast %0 : vector<1x16x32xf32> to vector<16x32xf32>
    %2 = arith.truncf %1 : vector<16x32xf32> to vector<16x32xbf16>
    %c0_2 = arith.constant 0 : index
    %c0_3 = arith.constant 0 : index
    %3 = vector.load %arg2[%c0_2, %c0_3] : memref<32x96xbf16, #tpu.memory_space<vmem>>, vector<32x96xbf16>
    %cst = arith.constant dense<0.000000e+00> : vector<16x96xf32>
    %4 = tpu.matmul %2, %3, %cst {dimension_numbers = #tpu.dot_dimension_numbers<[1], [0], [0], [1], [0, 0, 1, 1], [], []>} : vector<16x32xbf16>, vector<32x96xbf16>, vector<16x96xf32> -> vector<16x96xf32>
    %c0_4 = arith.constant 0 : index
    %c0_5 = arith.constant 0 : index
    %5 = vector.load %arg3[%c0_4, %c0_5] : memref<1x96xf32, #tpu.memory_space<vmem>>, vector<1x96xf32>
    %6 = vector.shape_cast %5 : vector<1x96xf32> to vector<96xf32>
    %7 = vector.shape_cast %6 : vector<96xf32> to vector<1x96xf32>
    %8 = vector.broadcast %7 : vector<1x96xf32> to vector<16x96xf32>
    %9 = arith.addf %4, %8 : vector<16x96xf32>
    %10 = vector.extract_strided_slice %9 {offsets = [0, 0], sizes = [16, 32], strides = [1, 1]} : vector<16x96xf32> to vector<16x32xf32>
    %cst_6 = arith.constant 0.353553385 : f32
    %11 = vector.broadcast %cst_6 : f32 to vector<16x32xf32>
    %12 = arith.mulf %10, %11 : vector<16x32xf32>
    %13 = arith.truncf %12 : vector<16x32xf32> to vector<16x32xbf16>
    %14 = vector.extract_strided_slice %9 {offsets = [0, 32], sizes = [16, 32], strides = [1, 1]} : vector<16x96xf32> to vector<16x32xf32>
    %15 = arith.truncf %14 : vector<16x32xf32> to vector<16x32xbf16>
    %16 = vector.extract_strided_slice %9 {offsets = [0, 64], sizes = [16, 32], strides = [1, 1]} : vector<16x96xf32> to vector<16x32xf32>
    %17 = arith.truncf %16 : vector<16x32xf32> to vector<16x32xbf16>
    %c0_7 = arith.constant 0 : index
    %c0_8 = arith.constant 0 : index
    %c0_9 = arith.constant 0 : index
    %c0_10 = arith.constant 0 : index
    %18 = vector.load %arg4[%c0_7, %c0_8, %c0_9, %c0_10] : memref<1x1x1x16xf32, #tpu.memory_space<vmem>>, vector<1x1x1x16xf32>
    %19 = vector.shape_cast %18 : vector<1x1x1x16xf32> to vector<16xf32>
    %20 = vector.shape_cast %19 : vector<16xf32> to vector<1x16xf32>
    %21 = vector.shape_cast %20 : vector<1x16xf32> to vector<1x16xf32>
    %22 = vector.broadcast %21 : vector<1x16xf32> to vector<16x16xf32>
    %23 = vector.extract_strided_slice %13 {offsets = [0, 0], sizes = [16, 8], strides = [1, 1]} : vector<16x32xbf16> to vector<16x8xbf16>
    %24 = vector.extract_strided_slice %15 {offsets = [0, 0], sizes = [16, 8], strides = [1, 1]} : vector<16x32xbf16> to vector<16x8xbf16>
    %25 = vector.extract_strided_slice %17 {offsets = [0, 0], sizes = [16, 8], strides = [1, 1]} : vector<16x32xbf16> to vector<16x8xbf16>
    %cst_11 = arith.constant dense<0.000000e+00> : vector<16x16xf32>
    %26 = tpu.matmul %23, %24, %cst_11 {dimension_numbers = #tpu.dot_dimension_numbers<[1], [1], [0], [0], [0, 0, 1, 0], [], []>} : vector<16x8xbf16>, vector<16x8xbf16>, vector<16x16xf32> -> vector<16x16xf32>
    %27 = arith.addf %26, %22 : vector<16x16xf32>
    %cst_12 = arith.constant dense<0xFF800000> : vector<16xf32>
    %28 = vector.multi_reduction <maximumf>, %27, %cst_12 [1] : vector<16x16xf32> to vector<16xf32>
    %29 = vector.shape_cast %28 : vector<16xf32> to vector<16x1xf32>
    %30 = vector.broadcast %29 : vector<16x1xf32> to vector<16x16xf32>
    %31 = arith.subf %27, %30 : vector<16x16xf32>
    %32 = math.exp %31 : vector<16x16xf32>
    %cst_13 = arith.constant dense<0.000000e+00> : vector<16xf32>
    %33 = vector.multi_reduction <add>, %32, %cst_13 [1] : vector<16x16xf32> to vector<16xf32>
    %34 = vector.shape_cast %33 : vector<16xf32> to vector<16x1xf32>
    %35 = tpu.reciprocal %34 {approx = true} : vector<16x1xf32> -> vector<16x1xf32>
    %36 = vector.broadcast %35 : vector<16x1xf32> to vector<16x16xf32>
    %37 = arith.mulf %32, %36 : vector<16x16xf32>
    %38 = arith.truncf %37 : vector<16x16xf32> to vector<16x16xbf16>
    %cst_14 = arith.constant dense<0.000000e+00> : vector<16x8xf32>
    %39 = tpu.matmul %38, %25, %cst_14 {dimension_numbers = #tpu.dot_dimension_numbers<[1], [0], [0], [1], [0, 0, 1, 1], [], []>} : vector<16x16xbf16>, vector<16x8xbf16>, vector<16x8xf32> -> vector<16x8xf32>
    %c0_15 = arith.constant 0 : index
    %c0_16 = arith.constant 0 : index
    %c0_17 = arith.constant 0 : index
    %40 = vector.load %arg6[%c0_15, %c0_16, %c0_17] : memref<1x16x32xf32, #tpu.memory_space<vmem>>, vector<1x16x8xf32>
    %41 = vector.shape_cast %40 : vector<1x16x8xf32> to vector<16x8xf32>
    %42 = vector.shape_cast %39 : vector<16x8xf32> to vector<1x16x8xf32>
    tpu.vector_store %arg6[%c0_15, %c0_16, %c0_17], %42 {strides = array<i32>} : memref<1x16x32xf32, #tpu.memory_space<vmem>>, vector<1x16x8xf32>,
    %43 = vector.extract_strided_slice %13 {offsets = [0, 8], sizes = [16, 8], strides = [1, 1]} : vector<16x32xbf16> to vector<16x8xbf16>
    %44 = vector.extract_strided_slice %15 {offsets = [0, 8], sizes = [16, 8], strides = [1, 1]} : vector<16x32xbf16> to vector<16x8xbf16>
    %45 = vector.extract_strided_slice %17 {offsets = [0, 8], sizes = [16, 8], strides = [1, 1]} : vector<16x32xbf16> to vector<16x8xbf16>
    %cst_18 = arith.constant dense<0.000000e+00> : vector<16x16xf32>
    %46 = tpu.matmul %43, %44, %cst_18 {dimension_numbers = #tpu.dot_dimension_numbers<[1], [1], [0], [0], [0, 0, 1, 0], [], []>} : vector<16x8xbf16>, vector<16x8xbf16>, vector<16x16xf32> -> vector<16x16xf32>
    %47 = arith.addf %46, %22 : vector<16x16xf32>
    %cst_19 = arith.constant dense<0xFF800000> : vector<16xf32>
    %48 = vector.multi_reduction <maximumf>, %47, %cst_19 [1] : vector<16x16xf32> to vector<16xf32>
    %49 = vector.shape_cast %48 : vector<16xf32> to vector<16x1xf32>
    %50 = vector.broadcast %49 : vector<16x1xf32> to vector<16x16xf32>
    %51 = arith.subf %47, %50 : vector<16x16xf32>
    %52 = math.exp %51 : vector<16x16xf32>
    %cst_20 = arith.constant dense<0.000000e+00> : vector<16xf32>
    %53 = vector.multi_reduction <add>, %52, %cst_20 [1] : vector<16x16xf32> to vector<16xf32>
    %54 = vector.shape_cast %53 : vector<16xf32> to vector<16x1xf32>
    %55 = tpu.reciprocal %54 {approx = true} : vector<16x1xf32> -> vector<16x1xf32>
    %56 = vector.broadcast %55 : vector<16x1xf32> to vector<16x16xf32>
    %57 = arith.mulf %52, %56 : vector<16x16xf32>
    %58 = arith.truncf %57 : vector<16x16xf32> to vector<16x16xbf16>
    %cst_21 = arith.constant dense<0.000000e+00> : vector<16x8xf32>
    %59 = tpu.matmul %58, %45, %cst_21 {dimension_numbers = #tpu.dot_dimension_numbers<[1], [0], [0], [1], [0, 0, 1, 1], [], []>} : vector<16x16xbf16>, vector<16x8xbf16>, vector<16x8xf32> -> vector<16x8xf32>
    %c0_22 = arith.constant 0 : index
    %c0_23 = arith.constant 0 : index
    %c8 = arith.constant 8 : index
    %60 = vector.load %arg6[%c0_22, %c0_23, %c8] : memref<1x16x32xf32, #tpu.memory_space<vmem>>, vector<1x16x8xf32>
    %61 = vector.shape_cast %60 : vector<1x16x8xf32> to vector<16x8xf32>
    %62 = vector.shape_cast %59 : vector<16x8xf32> to vector<1x16x8xf32>
    tpu.vector_store %arg6[%c0_22, %c0_23, %c8], %62 {strides = array<i32>} : memref<1x16x32xf32, #tpu.memory_space<vmem>>, vector<1x16x8xf32>,
    %63 = vector.extract_strided_slice %13 {offsets = [0, 16], sizes = [16, 8], strides = [1, 1]} : vector<16x32xbf16> to vector<16x8xbf16>
    %64 = vector.extract_strided_slice %15 {offsets = [0, 16], sizes = [16, 8], strides = [1, 1]} : vector<16x32xbf16> to vector<16x8xbf16>
    %65 = vector.extract_strided_slice %17 {offsets = [0, 16], sizes = [16, 8], strides = [1, 1]} : vector<16x32xbf16> to vector<16x8xbf16>
    %cst_24 = arith.constant dense<0.000000e+00> : vector<16x16xf32>
    %66 = tpu.matmul %63, %64, %cst_24 {dimension_numbers = #tpu.dot_dimension_numbers<[1], [1], [0], [0], [0, 0, 1, 0], [], []>} : vector<16x8xbf16>, vector<16x8xbf16>, vector<16x16xf32> -> vector<16x16xf32>
    %67 = arith.addf %66, %22 : vector<16x16xf32>
    %cst_25 = arith.constant dense<0xFF800000> : vector<16xf32>
    %68 = vector.multi_reduction <maximumf>, %67, %cst_25 [1] : vector<16x16xf32> to vector<16xf32>
    %69 = vector.shape_cast %68 : vector<16xf32> to vector<16x1xf32>
    %70 = vector.broadcast %69 : vector<16x1xf32> to vector<16x16xf32>
    %71 = arith.subf %67, %70 : vector<16x16xf32>
    %72 = math.exp %71 : vector<16x16xf32>
    %cst_26 = arith.constant dense<0.000000e+00> : vector<16xf32>
    %73 = vector.multi_reduction <add>, %72, %cst_26 [1] : vector<16x16xf32> to vector<16xf32>
    %74 = vector.shape_cast %73 : vector<16xf32> to vector<16x1xf32>
    %75 = tpu.reciprocal %74 {approx = true} : vector<16x1xf32> -> vector<16x1xf32>
    %76 = vector.broadcast %75 : vector<16x1xf32> to vector<16x16xf32>
    %77 = arith.mulf %72, %76 : vector<16x16xf32>
    %78 = arith.truncf %77 : vector<16x16xf32> to vector<16x16xbf16>
    %cst_27 = arith.constant dense<0.000000e+00> : vector<16x8xf32>
    %79 = tpu.matmul %78, %65, %cst_27 {dimension_numbers = #tpu.dot_dimension_numbers<[1], [0], [0], [1], [0, 0, 1, 1], [], []>} : vector<16x16xbf16>, vector<16x8xbf16>, vector<16x8xf32> -> vector<16x8xf32>
    %c0_28 = arith.constant 0 : index
    %c0_29 = arith.constant 0 : index
    %c16 = arith.constant 16 : index
    %80 = vector.load %arg6[%c0_28, %c0_29, %c16] : memref<1x16x32xf32, #tpu.memory_space<vmem>>, vector<1x16x8xf32>
    %81 = vector.shape_cast %80 : vector<1x16x8xf32> to vector<16x8xf32>
    %82 = vector.shape_cast %79 : vector<16x8xf32> to vector<1x16x8xf32>
    tpu.vector_store %arg6[%c0_28, %c0_29, %c16], %82 {strides = array<i32>} : memref<1x16x32xf32, #tpu.memory_space<vmem>>, vector<1x16x8xf32>,
    %83 = vector.extract_strided_slice %13 {offsets = [0, 24], sizes = [16, 8], strides = [1, 1]} : vector<16x32xbf16> to vector<16x8xbf16>
    %84 = vector.extract_strided_slice %15 {offsets = [0, 24], sizes = [16, 8], strides = [1, 1]} : vector<16x32xbf16> to vector<16x8xbf16>
    %85 = vector.extract_strided_slice %17 {offsets = [0, 24], sizes = [16, 8], strides = [1, 1]} : vector<16x32xbf16> to vector<16x8xbf16>
    %cst_30 = arith.constant dense<0.000000e+00> : vector<16x16xf32>
    %86 = tpu.matmul %83, %84, %cst_30 {dimension_numbers = #tpu.dot_dimension_numbers<[1], [1], [0], [0], [0, 0, 1, 0], [], []>} : vector<16x8xbf16>, vector<16x8xbf16>, vector<16x16xf32> -> vector<16x16xf32>
    %87 = arith.addf %86, %22 : vector<16x16xf32>
    %cst_31 = arith.constant dense<0xFF800000> : vector<16xf32>
    %88 = vector.multi_reduction <maximumf>, %87, %cst_31 [1] : vector<16x16xf32> to vector<16xf32>
    %89 = vector.shape_cast %88 : vector<16xf32> to vector<16x1xf32>
    %90 = vector.broadcast %89 : vector<16x1xf32> to vector<16x16xf32>
    %91 = arith.subf %87, %90 : vector<16x16xf32>
    %92 = math.exp %91 : vector<16x16xf32>
    %cst_32 = arith.constant dense<0.000000e+00> : vector<16xf32>
    %93 = vector.multi_reduction <add>, %92, %cst_32 [1] : vector<16x16xf32> to vector<16xf32>
    %94 = vector.shape_cast %93 : vector<16xf32> to vector<16x1xf32>
    %95 = tpu.reciprocal %94 {approx = true} : vector<16x1xf32> -> vector<16x1xf32>
    %96 = vector.broadcast %95 : vector<16x1xf32> to vector<16x16xf32>
    %97 = arith.mulf %92, %96 : vector<16x16xf32>
    %98 = arith.truncf %97 : vector<16x16xf32> to vector<16x16xbf16>
    %cst_33 = arith.constant dense<0.000000e+00> : vector<16x8xf32>
    %99 = tpu.matmul %98, %85, %cst_33 {dimension_numbers = #tpu.dot_dimension_numbers<[1], [0], [0], [1], [0, 0, 1, 1], [], []>} : vector<16x16xbf16>, vector<16x8xbf16>, vector<16x8xf32> -> vector<16x8xf32>
    %c0_34 = arith.constant 0 : index
    %c0_35 = arith.constant 0 : index
    %c24 = arith.constant 24 : index
    %100 = vector.load %arg6[%c0_34, %c0_35, %c24] : memref<1x16x32xf32, #tpu.memory_space<vmem>>, vector<1x16x8xf32>
    %101 = vector.shape_cast %100 : vector<1x16x8xf32> to vector<16x8xf32>
    %102 = vector.shape_cast %99 : vector<16x8xf32> to vector<1x16x8xf32>
    tpu.vector_store %arg6[%c0_34, %c0_35, %c24], %102 {strides = array<i32>} : memref<1x16x32xf32, #tpu.memory_space<vmem>>, vector<1x16x8xf32>,
    %c0_36 = arith.constant 0 : index
    %c0_37 = arith.constant 0 : index
    %c0_38 = arith.constant 0 : index
    %103 = vector.load %arg6[%c0_36, %c0_37, %c0_38] : memref<1x16x32xf32, #tpu.memory_space<vmem>>, vector<1x16x32xf32>
    %c0_39 = arith.constant 0 : index
    %c0_40 = arith.constant 0 : index
    %c0_41 = arith.constant 0 : index
    %104 = vector.load %arg5[%c0_39, %c0_40, %c0_41] : memref<1x16x32xf32, #tpu.memory_space<vmem>>, vector<1x16x32xf32>
    tpu.vector_store %arg5[%c0_39, %c0_40, %c0_41], %103 {strides = array<i32>} : memref<1x16x32xf32, #tpu.memory_space<vmem>>, vector<1x16x32xf32>,
    return
  }
  func.func @transform_0(%arg0: i32) -> (i32, i32, i32) {
    %c0_i32 = arith.constant 0 : i32
    %c0_i32_0 = arith.constant 0 : i32
    %c0_i32_1 = arith.constant 0 : i32
    return %arg0, %c0_i32, %c0_i32_0 : i32, i32, i32
  }
  func.func @transform_1(%arg0: i32) -> (i32, i32) {
    %c0_i32 = arith.constant 0 : i32
    %c0_i32_0 = arith.constant 0 : i32
    %c0_i32_1 = arith.constant 0 : i32
    return %c0_i32, %c0_i32_0 : i32, i32
  }
  func.func @transform_2(%arg0: i32) -> (i32, i32) {
    %c0_i32 = arith.constant 0 : i32
    %c0_i32_0 = arith.constant 0 : i32
    %c0_i32_1 = arith.constant 0 : i32
    return %c0_i32, %c0_i32_0 : i32, i32
  }
  func.func @transform_3(%arg0: i32) -> (i32, i32, i32, i32) {
    %c0_i32 = arith.constant 0 : i32
    %c0_i32_0 = arith.constant 0 : i32
    %c0_i32_1 = arith.constant 0 : i32
    %c0_i32_2 = arith.constant 0 : i32
    return %arg0, %c0_i32, %c0_i32_0, %c0_i32_1 : i32, i32, i32, i32
  }
  func.func @transform_4(%arg0: i32) -> (i32, i32, i32) {
    %c0_i32 = arith.constant 0 : i32
    %c0_i32_0 = arith.constant 0 : i32
    %c0_i32_1 = arith.constant 0 : i32
    return %arg0, %c0_i32, %c0_i32_0 : i32, i32, i32
  }
}

</mosaic_0001>

<bundles_post_ra>
// kernel: tpu_custom_call.1
= control target key start
LH: loop header
LB: loop body
LE: loop exit
PB: predicated region body
PF: predicated region fallthrough
CT: control target
= control target key end

     0   :  { %9 = vsyncpa [#allocation4], 0  ;;  %s1651_s0 = inlined_call_operand.hbm [shape: f32[2,16,32], index: 0, kind: input, shape index: {}]   ;;  %s1652_s1 = inlined_call_operand.hbm [shape: bf16[32,96], index: 1, kind: input, shape index: {}]   ;;  %s1653_s2 = inlined_call_operand.vmem [shape: f32[1,96], index: 2, kind: input, shape index: {}]   ;;  %s1654_s3 = inlined_call_operand.vmem [shape: f32[2,1,1,16], index: 3, kind: input, shape index: {}]   ;;  %s1655_s4 = inlined_call_operand.hbm [shape: f32[2,16,32], index: 4, kind: output, shape index: {}]  }
   0x1   :  { %11 = vsyncpa [#allocation4 + $0x1], 0 }
   0x2   :  { %12 = vsyncpa [#allocation7], 0 }
   0x3   :  { %13 = vsyncpa [#allocation5], 0 }
   0x4   :  { %15 = vsyncpa [#allocation5 + $0x1], 0  ;;  %s1356_s15 = smov 0   ;;  %s1358_s16 = smov 0  }
   0x5   :  { %s1360_s17 = smov 0   ;;  %s1362_s18 = smov 0  }
   0x6 LB: > { %s1377_s19 = sadd.s32 4294967295, %s1305_s18   ;;  %s959_s20 = sadd.s32 4294967294, %s1305_s18   ;;  %s1305_s18 = sphi %s1362_s18, %s1675_s18   ;;  %s1301_s17 = sphi %s1360_s17, %s1674_s17   ;;  %s1297_s16 = sphi %s1358_s16, %s1673_s16   ;;  %s1293_s15 = sphi %s1356_s15, %s1672_s15  }
   0x7   : > { %p41_p0 = scmp.ne.s32.totalorder %s1297_s16, %s1293_s15  ;;  %p1656_p1 = scmp.eq.s32.totalorder %s1377_s19, 0 }
   0x8   : > { %p139_p3 = scmp.eq.s32.totalorder %s959_s20, 1  ;;  %p960_p5 = scmp.ge.s32.totalorder %s1305_s18, 1 }
   0x9   : > { %p1386_p4 = por %p1656_p1, %p41_p0  ;;  %p146_p7 = scmp.lt.s32.totalorder %s1305_s18, 3 }
   0xa   : > { %p1391_p6 = por %p139_p3, %p41_p0  ;;  %s1307_s24 = smov [#allocation6]  }
   0xb   : > { %s1659_s21 = scalar_select %p1386_p4, 1, 0 }
   0xc   : > { %s1660_s22 = scalar_select %p1391_p6, 1, 0 }
   0xd   : > { %p1396_p8 = pnand %p960_p5, %p146_p7  ;;  %s158_s25 = sshll.u32 %s1307_s24, 4  ;;  %s1400_s25 = int_to_ptr.vmem [resolvable:$true] %s158_s25 }
   0xe   : > { %s1412_s27 = sadd.s32 1, %s1305_s18   ;;  %s28_s28 = sadd.s32 1, %s1301_s17 }
   0xf   : > { %s1661_s23 = scalar_select %p1396_p8, 1, 0 }
  0x10   : > { %p1073_p9 = pneg %p1396_p8  ;;  %s25_s29 = ssub.s32 %s1305_s18, %s1412_s27 }
  0x11   : > { %s1177_s6 = scalar_lea.hbm %s1652_s1, 256 }
  0x12   : > { %p1407_p11 = pnand %p1073_p9, %p1656_p1  ;;  %p1178_p12 = scmp.ne.s32.totalorder %s1652_s1, %s1177_s6 }
  0x13   : > { %p1184_p5 = scmp.lt.u32.totalorder %s1177_s6, %s1652_s1 }
  0x14   : > { %p1179_p13 = pneg %p1407_p11 }
  0x16   : > { %p1180_p0 = pnand %p1179_p13, %p1178_p12 }
  0x18   : > { %p1181_p3 = pneg %p1180_p0 }
  0x1a   : > { %p1186_p7 = pnand %p1184_p5, %p1181_p3 }
  0x1c   : > { %1189 = shalt.err (!%p1186_p7)
}
  0x1d   : > { %s1190_s11 = scalar_lea.vmem %s1400_s25, 256  ;;  %p1198_p2 = scmp.lt.s32.totalorder %s1400_s25, %s1400_s25 }
  0x1e   : > { %p1191_p9 = scmp.ne.s32.totalorder %s1400_s25, %s1190_s11  ;;  %p1199_p6 = scmp.lt.s32.totalorder %s1190_s11, %s1190_s11 }
  0x20   : > { %p1193_p10 = pnand %p1191_p9, %p1179_p13  ;;  %p1200_p4 = por %p1199_p6, %p1198_p2 }
  0x22   : > { %p1194_p1 = pneg %p1193_p10 }
  0x24   : > { %p1201_p8 = pnand %p1200_p4, %p1194_p1 }
  0x26   : > { %1204 = shalt.err (!%p1201_p8)
}
  0x27   : > { %s1308_s12 = smov 64   ;;  %s1309_s13 = smov 4  }
  0x28   : > { %1076 = dma.hbm_to_vmem [thread:$0]  (!%p1407_p11), %s1652_s1, 256, %s1400_s25, [#allocation7], %s1308_s12, %s1308_s12, %s1309_s13  }
  0x29   : > { %p26_p2 = scmp.eq.s32.totalorder %s25_s29, 0  ;;  %p35_p1 = scmp.ne.s32.totalorder %s1301_s17, %s1297_s16 }
  0x2a   : > { %p36_p4 = scmp.eq.s32.totalorder %s1305_s18, 0  ;;  %p1086_p6 = scmp.lt.s32.totalorder %s1305_s18, 2 }
  0x2b   : > { %s1443_s24 = scalar_select %p26_p2, %s1301_s17, %s28_s28  }
  0x2c   : > { %p37_p8 = por %p36_p4, %p35_p1  ;;  %p1663_p10 = scmp.eq.s32.totalorder %s1377_s19, 1 }
  0x2d   : > { %s175_s5 = sand.u32 1, %s1301_s17   ;;  %s988_s6 = sshll.u32 %s1305_s18, 8 }
  0x2e   : > { %p1447_p12 = por %p1663_p10, %p35_p1  ;;  %s963_s7 = sshll.u32 %s175_s5, 4 }
  0x2f   : > { %s1456_s9 = scalar_lea.hbm %s1651_s0, %s988_s6  ;;  %s179_s25 = scalar_lea.vmem [#allocation3], %s963_s7 }
  0x30   : > { %s186_s28 = sshll.u32 %s179_s25, 4  ;;  %p1458_p11 = pnand %p1086_p6, %p37_p8  ;;  %s1462_s28 = int_to_ptr.vmem [resolvable:$true] %s186_s28 }
  0x31   : > { %s1464_s10 = scalar_lea.sflag [#allocation4], %s175_s5  ;;  %s1205_s11 = scalar_lea.hbm %s1456_s9, 256 }
  0x32   : > { %p1206_p13 = scmp.ne.s32.totalorder %s1456_s9, %s1205_s11  ;;  %p1207_p0 = pneg %p1458_p11 }
  0x33   : > { %s1210_s14 = scalar_lea.hbm %s1651_s0, 512  ;;  %p1211_p7 = scmp.lt.u32.totalorder %s1456_s9, %s1651_s0 }
  0x34   : > { %p1208_p3 = pnand %p1207_p0, %p1206_p13  ;;  %p1212_p9 = scmp.lt.u32.totalorder %s1210_s14, %s1205_s11 }
  0x35   : > { %p1214_p1 = scmp.lt.u32.totalorder %s1205_s11, %s1456_s9 }
  0x36   : > { %p1209_p5 = pneg %p1208_p3  ;;  %p1213_p2 = por %p1212_p9, %p1211_p7 }
  0x38   : > { %p1215_p4 = por %p1214_p1, %p1213_p2 }
  0x3a   : > { %p1216_p6 = pnand %p1215_p4, %p1209_p5 }
  0x3c   : > { %1219 = shalt.err (!%p1216_p6)
}
  0x3d   : > { %s1220_s5 = scalar_lea.vmem %s1462_s28, 256  ;;  %s1310_s7 = smov [#allocation3]  }
  0x3e   : > { %p1221_p8 = scmp.ne.s32.totalorder %s1462_s28, %s1220_s5  ;;  %s1225_s26 = sshll.u32 %s1310_s7, 4  ;;  %s1226_s26 = int_to_ptr.vmem [resolvable:$false] %s1225_s26 }
  0x3f   : > { %s1227_s8 = scalar_lea.vmem %s1226_s26, 512  ;;  %p1228_p3 = scmp.lt.s32.totalorder %s1462_s28, %s1226_s26 }
  0x40   : > { %p1223_p10 = pnand %p1221_p8, %p1207_p0  ;;  %p1229_p7 = scmp.lt.s32.totalorder %s1227_s8, %s1220_s5 }
  0x42   : > { %p1224_p13 = pneg %p1223_p10  ;;  %p1230_p9 = por %p1229_p7, %p1228_p3 }
  0x44   : > { %p1231_p2 = pnand %p1230_p9, %p1224_p13 }
  0x46   : > { %1234 = shalt.err (!%p1231_p2)
}
  0x47   : > { %s1311_s25 = smov 128   ;;  %s1312_s11 = smov 8  }
  0x48   : > { %1080 = dma.hbm_to_vmem [thread:$0]  (!%p1458_p11), %s1456_s9, 256, %s1462_s28, %s1464_s10, %s1311_s25, %s1311_s25, %s1312_s11  }
  0x49   : > { %p1666_p0 = scmp.ne.s32.totalorder %s1661_s23, 0 }
  0x4a   : > { %s1495_s12 = sand.u32 (!%p1666_p0), 1, %s1297_s16   ;;  %p1667_p5 = scmp.ne.s32.totalorder (!%p1666_p0), %s1659_s21, 0 }
  0x4b   : > { %204 = sbr.rel (%p1666_p0) target bundleno = 1390 (0x56e), region = 36  ;;  %s967_s13 = sshll.u32 (!%p1666_p0), %s1495_s12, 4 }
  0x4c   : > { %s207_s14 = scalar_lea.sflag (!%p1666_p0), [#allocation4], %s1495_s12  ;;  %s210_s20 = scalar_lea.vmem (!%p1666_p0), [#allocation3], %s967_s13 }
  0x52   : > { %1280 = dma.done.wait (%p1667_p5), %s207_s14, 256  }
  0x53   : > { %1282 = vsyncadd (%p1667_p5), %s207_s14, 4294967040  ;;  %p1668_p11 = scmp.eq.s32.totalorder %s1377_s19, 0 }
  0x55   : > { %1284 = dma.done.wait (%p1668_p11), [#allocation7], 256   ;;  %p1669_p1 = pmov %p1668_p11 }
  0x56   : > { %v1313_v0 = vmov 0.0   ;;  %vm1314_vm0 = vmmov 0   ;;  %v1143_v1 = vld [vmem:[#allocation6] sm:$0xff]   ;;  %v1144_v2 = vld [vmem:[#allocation6 + $0x8] sm:$0xff]   ;;  %vm272_vm1 = vcmask 261120   ;;  %s1315_s9 = smov 96  }
  0x57   : > { %1286 = vsyncadd (%p1669_p1), [#allocation7], 4294967040  ;;  %1009 = vmatprep.subr.bf16.mxu0 %v1313_v0  ;;  %1013 = vmatprep.mubr.msk.bf16.mxu0 %vm1314_vm0, %v1313_v0  ;;  %v246_v3 = vld [vmem:[%s210_s20] sm:$0xff]  ;;  %v247_v4 = vld [vmem:[%s210_s20 + $0x8] sm:$0xff]  ;;  %s1316_s28 = smov 120   ;;  %s1317_s29 = smov 88  }
  0x58   : > { %1017 = vmatprep.subr.bf16.mxu1 %v1313_v0  ;;  %1019 = vmatprep.mubr.msk.bf16.mxu1 %vm1314_vm0, %v1313_v0  ;;  %v248_v5 = vpack.c.bf16 %v247_v4, %v246_v3  ;;  %v970_v6 = vld [vmem:[%s1653_s2] ss:$0 sm:$0xff]  ;;  %s1318_s10 = smov 80   ;;  %s1319_s6 = smov 112   ;;  %vm331_vm2 = vcmask 64512   ;;  %vm379_vm3 = vcmask 130048  }
  0x59   : > { %1010 = vmatpush3.bf16.msra.mxu0 %v1143_v1  ;;  %s1320_s5 = smov 72   ;;  %s1321_s7 = smov 104   ;;  %vm582_vm4 = vcmask 130112   ;;  %vm714_vm5 = vcmask 195712   ;;  %vm846_vm6 = vcmask 261312  }
  0x5a   : > { %1011 = vmatprep.subr.bf16.mxu0 %v1313_v0  ;;  %p242_p4 = scmp.lt.s32.totalorder %s1377_s19, 1  ;;  %s1322_s14 = smov 56  }
  0x5b   : > { %s1323_s20 = smov 64   ;;  %s1324_s21 = smov 48  }
  0x5c   : > { %s243_s26 = scalar_select %p242_p4, %s1377_s19, 1 }
  0x5d   : > { %1012 = vmatpush3.bf16.msra.mxu0 %v1144_v2  ;;  %s1325_s23 = smov 40  }
  0x5e   : > { %1023 = vmatprep.subr.bf16.mxu0 %v1313_v0  ;;  %s244_s11 = scalar_lea.vmem %s1654_s3, %s243_s26 }
  0x5f   : > { %v974_v28 = vld [vmem:[%s244_s11] ss:$0 sm:$0xff] }
  0x60   : > { %1014 = vmatmul.mubr.msk.bf16.vlgmr.msra.gmra.mrb[0].mxu0 %vm272_vm1, %v248_v5 }
  0x61   : > { %1025 = vmatprep.mubr.msk.bf16.mxu0 %vm1314_vm0, %v1313_v0 }
 0x133   : > { %v310_v7 = vpop.f32.mrb[0].mxu0 }
 0x134   : > { %v311_v8 = vadd.f32 %v970_v6, %v310_v7  ;;  %v1015_v9 = vpop.f32.mrb[1].mxu0 }
 0x135   : > { %v313_v10 = vpop.f32.mrb[2].mxu0 }
 0x136   : > { %v314_v11 = vadd.f32 %v970_v6, %v313_v10  ;;  %v1016_v12 = vpop.f32.mrb[3].mxu0  ;;  %v317_v13 = vmul.f32 0.35355338, %v311_v8 }
 0x138   : > { %v318_v14 = vmul.f32 0.35355338, %v314_v11  ;;  %v1523_v15 = vpack.c.bf16 %v314_v11, %v311_v8 }
 0x13a   : > { %v319_v16 = vpack.c.bf16 %v318_v14, %v317_v13  ;;  %329 = vrot.lane.b32.xlu0 %v1523_v15, %s1315_s9  ;;  %s1326_s9 = smov 8  }
 0x13c   : > { %453 = vrot.lane.b32.xlu1 %v319_v16, %s1316_s28  ;;  %s1327_s28 = smov 16  }
 0x13e   : > { %455 = vrot.lane.b32.xlu0 %v1523_v15, %s1317_s29  ;;  %s1328_s29 = smov 24  }
 0x140   : > { %587 = vrot.lane.b32.xlu1 %v1523_v15, %s1318_s10  ;;  %s989_s10 = sshll.u32 %s1377_s19, 8  ;;  %s854_s19 = scalar_lea.sflag [#allocation5], %s1495_s12 }
 0x141   : > { %s1602_s8 = scalar_lea.hbm %s1655_s4, %s989_s10 }
 0x142   : > { %585 = vrot.lane.b32.xlu0 %v319_v16, %s1319_s6  ;;  %s241_s6 = scalar_lea.vmem [#allocation8], %s967_s13  ;;  %s1329_s13 = smov [#allocation8]  }
 0x143   : > { %s1239_s11 = sshll.u32 %s1329_s13, 4  ;;  %s1240_s11 = int_to_ptr.vmem [resolvable:$false] %s1239_s11 }
 0x144   : > { %719 = vrot.lane.b32.xlu1 %v1523_v15, %s1320_s5  ;;  %s867_s5 = sshll.u32 %s241_s6, 4  ;;  %s1605_s5 = int_to_ptr.vmem [resolvable:$true] %s867_s5 }
 0x145   : > { %s1235_s25 = scalar_lea.vmem %s1605_s5, 256  ;;  %p1242_p13 = scmp.lt.s32.totalorder %s1605_s5, %s1240_s11 }
 0x146   : > { %717 = vrot.lane.b32.xlu0 %v319_v16, %s1321_s7  ;;  %p1236_p6 = scmp.ne.s32.totalorder %s1605_s5, %s1235_s25 }
 0x148   : > { %p1237_p8 = pnand %p1236_p6, %p1447_p12 }
 0x14a   : > { %p1238_p10 = pneg %p1237_p8 }
 0x1ac   : > { %v330_v17 = vpop.permute.xlu0 %329 }
 0x1ad   : > { %v336_v18 = vsel %vm331_vm2, %v330_v17, 0 }
 0x1ae   : > { %1018 = vmatpush3.bf16.xpose.msra.mxu1 %v336_v18  ;;  %v454_v20 = vpop.permute.xlu1 %453 }
 0x1af   : > { %1029 = vmatprep.subr.bf16.mxu1 %v1313_v0 }
 0x1b0   : > { %v456_v19 = vpop.permute.xlu0 %455 }
 0x1b1   : > { %v461_v21 = vsel %vm331_vm2, %v456_v19, 0 }
 0x1b2   : > { %v588_v22 = vpop.permute.xlu1 %587 }
 0x1b3   : > { %v593_v23 = vsel %vm331_vm2, %v588_v22, 0 }
 0x1b4   : > { %v586_v25 = vpop.permute.xlu0 %585 }
 0x1b5   : > { %1020 = vmatmul.mubr.msk.bf16.vlgmr.msra.gmra.mrb[0].mxu1 %vm331_vm2, %v319_v16 }
 0x1b6   : > { %1030 = vmatpush3.bf16.xpose.msra.mxu1 %v461_v21  ;;  %1031 = vmatprep.mubr.msk.bf16.mxu1 %vm1314_vm0, %v1313_v0  ;;  %v720_v24 = vpop.permute.xlu1 %719 }
 0x1b7   : > { %1041 = vmatprep.subr.bf16.mxu1 %v1313_v0  ;;  %v725_v26 = vsel %vm331_vm2, %v720_v24, 0 }
 0x1b8   : > { %v718_v27 = vpop.permute.xlu0 %717 }
 0x1bd   : > { %1032 = vmatmul.mubr.msk.bf16.vlgmr.msra.gmra.mrb[4].mxu1 %vm331_vm2, %v454_v20 }
 0x1be   : > { %1042 = vmatpush3.bf16.xpose.msra.mxu1 %v593_v23  ;;  %1043 = vmatprep.mubr.msk.bf16.mxu1 %vm1314_vm0, %v1313_v0 }
 0x1bf   : > { %1053 = vmatprep.subr.bf16.mxu1 %v1313_v0 }
 0x1c5   : > { %1044 = vmatmul.mubr.msk.bf16.vlgmr.msra.gmra.mrb[8].mxu1 %vm331_vm2, %v586_v25 }
 0x1c6   : > { %1054 = vmatpush3.bf16.xpose.msra.mxu1 %v725_v26  ;;  %1055 = vmatprep.mubr.msk.bf16.mxu1 %vm1314_vm0, %v1313_v0 }
 0x1cd   : > { %1056 = vmatmul.mubr.msk.bf16.vlgmr.msra.gmra.mrb[12].mxu1 %vm331_vm2, %v718_v27 }
 0x288   : > { %v372_v29 = vpop.f32.mrb[0].mxu1 }
 0x289   : > { %v373_v30 = vadd.f32 %v974_v28, %v372_v29  ;;  %v1021_v31 = vpop.f32.mrb[1].mxu1 }
 0x28a   : > { %v375_v32 = vpop.f32.mrb[2].mxu1 }
 0x28b   : > { %v376_v33 = vadd.f32 %v974_v28, %v375_v32  ;;  %v1022_v34 = vpop.f32.mrb[3].mxu1  ;;  %v380_v35 = vsel %vm379_vm3, %v373_v30, -inf }
 0x28c   : > { %381 = vmax.xlane.f32.xlu1 %v380_v35 }
 0x28d   : > { %v383_v36 = vsel %vm379_vm3, %v376_v33, -inf }
 0x28e   : > { %384 = vmax.xlane.f32.xlu0 %v383_v36 }
 0x290   : > { %v497_v37 = vpop.f32.mrb[4].mxu1 }
 0x291   : > { %v498_v38 = vadd.f32 %v974_v28, %v497_v37  ;;  %v1033_v39 = vpop.f32.mrb[5].mxu1 }
 0x292   : > { %v500_v40 = vpop.f32.mrb[6].mxu1 }
 0x293   : > { %v501_v41 = vadd.f32 %v974_v28, %v500_v40  ;;  %v1034_v42 = vpop.f32.mrb[7].mxu1  ;;  %v504_v43 = vsel %vm379_vm3, %v498_v38, -inf }
 0x294   : > { %505 = vmax.xlane.f32.xlu0 %v504_v43 }
 0x295   : > { %v507_v44 = vsel %vm379_vm3, %v501_v41, -inf }
 0x296   : > { %508 = vmax.xlane.f32.xlu1 %v507_v44 }
 0x298   : > { %v629_v45 = vpop.f32.mrb[8].mxu1 }
 0x299   : > { %v630_v46 = vadd.f32 %v974_v28, %v629_v45  ;;  %v1045_v47 = vpop.f32.mrb[9].mxu1 }
 0x29a   : > { %v632_v48 = vpop.f32.mrb[10].mxu1 }
 0x29b   : > { %v633_v49 = vadd.f32 %v974_v28, %v632_v48  ;;  %v1046_v50 = vpop.f32.mrb[11].mxu1  ;;  %v636_v51 = vsel %vm379_vm3, %v630_v46, -inf }
 0x29c   : > { %637 = vmax.xlane.f32.xlu0 %v636_v51 }
 0x29d   : > { %v639_v52 = vsel %vm379_vm3, %v633_v49, -inf }
 0x29e   : > { %640 = vmax.xlane.f32.xlu1 %v639_v52 }
 0x2a0   : > { %v761_v53 = vpop.f32.mrb[12].mxu1 }
 0x2a1   : > { %v762_v54 = vadd.f32 %v974_v28, %v761_v53  ;;  %v1057_v55 = vpop.f32.mrb[13].mxu1 }
 0x2a2   : > { %v764_v56 = vpop.f32.mrb[14].mxu1 }
 0x2a3   : > { %v765_v57 = vadd.f32 %v974_v28, %v764_v56  ;;  %v1058_v58 = vpop.f32.mrb[15].mxu1  ;;  %v768_v59 = vsel %vm379_vm3, %v762_v54, -inf }
 0x2a4   : > { %769 = vmax.xlane.f32.xlu0 %v768_v59 }
 0x2a5   : > { %v771_v60 = vsel %vm379_vm3, %v765_v57, -inf }
 0x2a6   : > { %772 = vmax.xlane.f32.xlu1 %v771_v60 }
 0x319   : > { %v382_v61 = vpop.xlane.xlu1 %381 }
 0x31a   : > { %v386_v62 = vsub.f32 %v373_v30, %v382_v61 }
 0x31b   : > { %v385_v63 = vpop.xlane.xlu0 %384 }
 0x31c   : > { %v388_v1 = vmul.f32 1.442695, %v386_v62  ;;  %v387_v2 = vsub.f32 %v376_v33, %v385_v63 }
 0x31e   : > { %1145 = vpow2.f32 %v388_v1  ;;  %v390_v3 = vmul.f32 1.442695, %v387_v2 }
 0x320   : > { %1147 = vpow2.f32 %v390_v3 }
 0x321   : > { %v506_v4 = vpop.xlane.xlu0 %505 }
 0x322   : > { %v510_v5 = vsub.f32 %v498_v38, %v506_v4 }
 0x323   : > { %v509_v13 = vpop.xlane.xlu1 %508 }
 0x324   : > { %v512_v6 = vmul.f32 1.442695, %v510_v5  ;;  %v511_v14 = vsub.f32 %v501_v41, %v509_v13 }
 0x326   : > { %1149 = vpow2.f32 %v512_v6  ;;  %v514_v18 = vmul.f32 1.442695, %v511_v14 }
 0x328   : > { %v1146_v7 = vpop.eup %1145  ;;  %1151 = vpow2.f32 %v514_v18 }
 0x329   : > { %v392_v8 = vsel %vm379_vm3, %v1146_v7, 0.0  ;;  %v638_v17 = vpop.xlane.xlu0 %637 }
 0x32a   : > { %v1148_v9 = vpop.eup %1147  ;;  %393 = vadd.xlane.f32.xlu0 %v392_v8  ;;  %v642_v21 = vsub.f32 %v630_v46, %v638_v17 }
 0x32b   : > { %v395_v10 = vsel %vm379_vm3, %v1148_v9, 0.0  ;;  %v641_v16 = vpop.xlane.xlu1 %640 }
 0x32c   : > { %396 = vadd.xlane.f32.xlu1 %v395_v10  ;;  %v643_v19 = vsub.f32 %v633_v49, %v641_v16  ;;  %v644_v25 = vmul.f32 1.442695, %v642_v21 }
 0x32e   : > { %v646_v23 = vmul.f32 1.442695, %v643_v19 }
 0x330   : > { %v1561_v11 = vpop.eup %1149  ;;  %1153 = vpow2.f32 %v646_v23 }
 0x331   : > { %v516_v12 = vsel %vm379_vm3, %v1561_v11, 0.0  ;;  %v770_v22 = vpop.xlane.xlu0 %769  ;;  %1155 = vpow2.f32 %v644_v25 }
 0x332   : > { %517 = vadd.xlane.f32.xlu0 %v516_v12  ;;  %v774_v26 = vsub.f32 %v762_v54, %v770_v22  ;;  %v1152_v29 = vpop.eup %1151 }
 0x333   : > { %v773_v20 = vpop.xlane.xlu1 %772  ;;  %v519_v30 = vsel %vm379_vm3, %v1152_v29, 0.0 }
 0x334   : > { %v775_v24 = vsub.f32 %v765_v57, %v773_v20  ;;  %v776_v28 = vmul.f32 1.442695, %v774_v26 }
 0x336   : > { %v778_v27 = vmul.f32 1.442695, %v775_v24 }
 0x338   : > { %1157 = vpow2.f32 %v778_v27 }
 0x339   : > { %1159 = vpow2.f32 %v776_v28 }
 0x33a   : > { %v1154_v31 = vpop.eup %1153 }
 0x33b   : > { %v1156_v32 = vpop.eup %1155  ;;  %v651_v33 = vsel %vm379_vm3, %v1154_v31, 0.0 }
 0x33c   : > { %v648_v35 = vsel %vm379_vm3, %v1156_v32, 0.0 }
 0x33d   : > { %527 = vrot.lane.b32.xlu1 %v1523_v15, %s1322_s14  ;;  %s1241_s14 = scalar_lea.vmem %s1240_s11, 512 }
 0x33e   : > { %p1243_p3 = scmp.lt.s32.totalorder %s1241_s14, %s1235_s25 }
 0x340   : > { %p1244_p7 = por %p1243_p3, %p1242_p13 }
 0x342   : > { %v1569_v34 = vpop.eup %1157  ;;  %p1245_p9 = pnand %p1244_p7, %p1238_p10 }
 0x343   : > { %v1160_v36 = vpop.eup %1159  ;;  %v783_v37 = vsel %vm379_vm3, %v1569_v34, 0.0 }
 0x344   : > { %v780_v38 = vsel %vm379_vm3, %v1160_v36, 0.0 }
 0x348   : > { %403 = vrot.lane.b32.xlu0 %v1523_v15, %s1323_s20 }
 0x361   : > { %520 = vadd.xlane.f32.xlu1 %v519_v30 }
 0x365   : > { %652 = vadd.xlane.f32.xlu1 %v651_v33 }
 0x367   : > { %649 = vadd.xlane.f32.xlu0 %v648_v35 }
 0x369   : > { %784 = vadd.xlane.f32.xlu1 %v783_v37 }
 0x36b   : > { %781 = vadd.xlane.f32.xlu0 %v780_v38 }
 0x37a   : > { %659 = vrot.lane.b32.xlu1 %v1523_v15, %s1324_s21 }
 0x381   : > { %791 = vrot.lane.b32.xlu0 %v1523_v15, %s1325_s23 }
 0x3b7   : > { %v394_v39 = vpop.xlane.xlu0 %393 }
 0x3b8   : > { %1161 = vrcp.f32 %v394_v39 }
 0x3b9   : > { %v397_v40 = vpop.xlane.xlu1 %396 }
 0x3ba   : > { %1163 = vrcp.f32 %v397_v40 }
 0x3bd   : > { %v528_v48 = vpop.permute.xlu1 %527 }
 0x3bf   : > { %v518_v41 = vpop.xlane.xlu0 %517 }
 0x3c0   : > { %1165 = vrcp.f32 %v518_v41 }
 0x3c2   : > { %v1162_v42 = vpop.eup %1161 }
 0x3c3   : > { %v404_v43 = vpop.permute.xlu0 %403  ;;  %v400_v45 = vmul.f32 %v1162_v42, %v1146_v7 }
 0x3c4   : > { %v1164_v44 = vpop.eup %1163  ;;  %1024 = vmatpush3.bf16.msra.mxu0 %v404_v43 }
 0x3c5   : > { %v401_v46 = vmul.f32 %v1164_v44, %v1148_v9  ;;  %1035 = vmatprep.subr.bf16.mxu0 %v1313_v0 }
 0x3c7   : > { %v402_v47 = vpack.c.bf16 %v401_v46, %v400_v45 }
 0x3c9   : > { %1026 = vmatmul.mubr.msk.bf16.vlgmr.msra.gmra.mrb[4].mxu0 %vm379_vm3, %v402_v47 }
 0x3ca   : > { %1036 = vmatpush3.bf16.msra.mxu0 %v528_v48  ;;  %1037 = vmatprep.mubr.msk.bf16.mxu0 %vm1314_vm0, %v1313_v0  ;;  %v1166_v51 = vpop.eup %1165 }
 0x3cb   : > { %1047 = vmatprep.subr.bf16.mxu0 %v1313_v0  ;;  %v524_v55 = vmul.f32 %v1166_v51, %v1561_v11 }
 0x3ee   : > { %v521_v15 = vpop.xlane.xlu1 %520 }
 0x3ef   : > { %1167 = vrcp.f32 %v521_v15 }
 0x3f2   : > { %v653_v49 = vpop.xlane.xlu1 %652 }
 0x3f3   : > { %1169 = vrcp.f32 %v653_v49 }
 0x3f4   : > { %v650_v50 = vpop.xlane.xlu0 %649 }
 0x3f5   : > { %1171 = vrcp.f32 %v650_v50 }
 0x3f6   : > { %v785_v52 = vpop.xlane.xlu1 %784 }
 0x3f8   : > { %v782_v53 = vpop.xlane.xlu0 %781 }
 0x3f9   : > { %v1168_v54 = vpop.eup %1167  ;;  %1173 = vrcp.f32 %v782_v53 }
 0x3fa   : > { %v525_v56 = vmul.f32 %v1168_v54, %v1152_v29  ;;  %1175 = vrcp.f32 %v785_v52  ;;  %v660_v59 = vpop.permute.xlu1 %659 }
 0x3fc   : > { %v526_v57 = vpack.c.bf16 %v525_v56, %v524_v55  ;;  %v792_v2 = vpop.permute.xlu0 %791 }
 0x3fd   : > { %v1170_v58 = vpop.eup %1169 }
 0x3fe   : > { %1038 = vmatmul.mubr.msk.bf16.vlgmr.msra.gmra.mrb[8].mxu0 %vm379_vm3, %v526_v57  ;;  %v657_v62 = vmul.f32 %v1170_v58, %v1154_v31 }
 0x3ff   : > { %v1172_v60 = vpop.eup %1171  ;;  %1048 = vmatpush3.bf16.msra.mxu0 %v660_v59  ;;  %1049 = vmatprep.mubr.msk.bf16.mxu0 %vm1314_vm0, %v1313_v0 }
 0x400   : > { %v656_v61 = vmul.f32 %v1172_v60, %v1156_v32  ;;  %1059 = vmatprep.subr.bf16.mxu0 %v1313_v0 }
 0x402   : > { %v658_v63 = vpack.c.bf16 %v657_v62, %v656_v61 }
 0x403   : > { %v1174_v1 = vpop.eup %1173 }
 0x404   : > { %v1176_v3 = vpop.eup %1175  ;;  %v788_v4 = vmul.f32 %v1174_v1, %v1160_v36 }
 0x405   : > { %v789_v5 = vmul.f32 %v1176_v3, %v1569_v34 }
 0x406   : > { %1050 = vmatmul.mubr.msk.bf16.vlgmr.msra.gmra.mrb[12].mxu0 %vm379_vm3, %v658_v63 }
 0x407   : > { %1060 = vmatpush3.bf16.msra.mxu0 %v792_v2  ;;  %1061 = vmatprep.mubr.msk.bf16.mxu0 %vm1314_vm0, %v1313_v0  ;;  %v790_v6 = vpack.c.bf16 %v789_v5, %v788_v4 }
 0x40e   : > { %1062 = vmatmul.mubr.msk.bf16.vlgmr.msra.gmra.mrb[16].mxu0 %vm379_vm3, %v790_v6 }
 0x49c   : > { %v443_v7 = vpop.f32.mrb[4].mxu0 }
 0x49d   : > { %450 = vst.msk [vmem:[#allocation2] sm:$0xff] %vm331_vm2, %v443_v7  ;;  %v1027_v8 = vpop.f32.mrb[5].mxu0 }
 0x49e   : > { %v446_v9 = vpop.f32.mrb[6].mxu0 }
 0x49f   : > { %451 = vst.msk [vmem:[#allocation2 + $0x8] sm:$0xff] %vm331_vm2, %v446_v9  ;;  %v1028_v10 = vpop.f32.mrb[7].mxu0 }
 0x4d1   : > { %v567_v11 = vpop.f32.mrb[8].mxu0 }
 0x4d2   : > { %576 = vrot.lane.b32.xlu1 %v567_v11, %s1326_s9  ;;  %v1039_v12 = vpop.f32.mrb[9].mxu0 }
 0x4d3   : > { %v570_v0 = vpop.f32.mrb[10].mxu0 }
 0x4d4   : > { %578 = vrot.lane.b32.xlu0 %v570_v0, %s1326_s9  ;;  %v1040_v13 = vpop.f32.mrb[11].mxu0 }
 0x4d9   : > { %v699_v14 = vpop.f32.mrb[12].mxu0 }
 0x4da   : > { %708 = vrot.lane.b32.xlu1 %v699_v14, %s1327_s28  ;;  %v1051_v16 = vpop.f32.mrb[13].mxu0 }
 0x4db   : > { %v702_v17 = vpop.f32.mrb[14].mxu0 }
 0x4dc   : > { %710 = vrot.lane.b32.xlu0 %v702_v17, %s1327_s28  ;;  %v1052_v18 = vpop.f32.mrb[15].mxu0 }
 0x4e1   : > { %v831_v19 = vpop.f32.mrb[16].mxu0 }
 0x4e2   : > { %840 = vrot.lane.b32.xlu1 %v831_v19, %s1328_s29  ;;  %v1063_v20 = vpop.f32.mrb[17].mxu0 }
 0x4e3   : > { %v834_v21 = vpop.f32.mrb[18].mxu0 }
 0x4e4   : > { %842 = vrot.lane.b32.xlu0 %v834_v21, %s1328_s29  ;;  %v1064_v22 = vpop.f32.mrb[19].mxu0 }
 0x544   : > { %v577_v23 = vpop.permute.xlu1 %576 }
 0x545   : > { %583 = vst.msk [vmem:[#allocation2] sm:$0xff] %vm582_vm4, %v577_v23 }
 0x546   : > { %v579_v24 = vpop.permute.xlu0 %578 }
 0x547   : > { %584 = vst.msk [vmem:[#allocation2 + $0x8] sm:$0xff] %vm582_vm4, %v579_v24 }
 0x54c   : > { %v709_v25 = vpop.permute.xlu1 %708 }
 0x54d   : > { %715 = vst.msk [vmem:[#allocation2] sm:$0xff] %vm714_vm5, %v709_v25 }
 0x54e   : > { %v711_v26 = vpop.permute.xlu0 %710 }
 0x54f   : > { %716 = vst.msk [vmem:[#allocation2 + $0x8] sm:$0xff] %vm714_vm5, %v711_v26 }
 0x554   : > { %v841_v27 = vpop.permute.xlu1 %840 }
 0x555   : > { %847 = vst.msk [vmem:[#allocation2] sm:$0xff] %vm846_vm6, %v841_v27 }
 0x556   : > { %v843_v28 = vpop.permute.xlu0 %842 }
 0x557   : > { %848 = vst.msk [vmem:[#allocation2 + $0x8] sm:$0xff] %vm846_vm6, %v843_v28 }
 0x55c   : > { %v849_v29 = vld [vmem:[#allocation2] sm:$0xff] }
 0x55d   : > { %851 = vst.msk [vmem:[%s241_s6] sm:$0xff] %vm272_vm1, %v849_v29 }
 0x55e   : > { %v850_v30 = vld [vmem:[#allocation2 + $0x8] sm:$0xff] }
 0x55f   : > { %852 = vst.msk [vmem:[%s241_s6 + $0x8] sm:$0xff] %vm272_vm1, %v850_v30 }
 0x560   : > { %1248 = shalt.err (!%p1245_p9)
}
 0x561   : > { %s1249_s20 = scalar_lea.hbm %s1602_s8, 256  ;;  %s1253_s28 = scalar_lea.hbm %s1655_s4, 512 }
 0x562   : > { %p1250_p2 = scmp.ne.s32.totalorder %s1602_s8, %s1249_s20  ;;  %p1254_p11 = scmp.lt.u32.totalorder %s1602_s8, %s1655_s4 }
 0x563   : > { %p1255_p1 = scmp.lt.u32.totalorder %s1253_s28, %s1249_s20  ;;  %p1257_p6 = scmp.lt.u32.totalorder %s1249_s20, %s1602_s8 }
 0x564   : > { %p1251_p0 = pnand %p1250_p2, %p1447_p12 }
 0x565   : > { %p1256_p4 = por %p1255_p1, %p1254_p11 }
 0x566   : > { %p1252_p5 = pneg %p1251_p0 }
 0x567   : > { %p1258_p8 = por %p1257_p6, %p1256_p4 }
 0x569   : > { %p1259_p10 = pnand %p1258_p8, %p1252_p5 }
 0x56b   : > { %1262 = shalt.err (!%p1259_p10)
}
 0x56c   : > { %s1330_s6 = smov 128  }
 0x56d   : > { %1071 = dma.vmem_to_hbm [thread:$0]  (%p1447_p12), %s1605_s5, 256, %s1602_s8, %s854_s19, %s1330_s6, %s1330_s6, %s1326_s9  }
 0x56e PF: > { %s882_s7 = sand.u32 1, %s1293_s15   ;;  %p1670_p13 = scmp.ne.s32.totalorder %s1660_s22, 0 }
 0x56f   : > { %p1671_p3 = scmp.ge.s32.totalorder %s1305_s18, 2  ;;  %s883_s26 = scalar_lea.sflag [#allocation5], %s882_s7 }
 0x571   : > { %p1082_p7 = pnand %p1671_p3, %p1670_p13 }
 0x573   : > { %1288 = dma.done.wait (!%p1082_p7), %s883_s26, 256  }
 0x574   : > { %1290 = vsyncadd (!%p1082_p7), %s883_s26, 4294967040  ;;  %p18_p9 = scmp.ge.s32.totalorder %s1412_s27, 4   ;;  %s1672_s15 = smov %s1297_s16 }
 0x575   : > { %s1673_s16 = smov %s1301_s17  ;;  %s1674_s17 = smov %s1443_s24 }
 0x576   : > { %s1675_s18 = smov %s1412_s27  ;;  %20 = sbr.rel (!%p18_p9) target bundleno = 6 (0x6), region = 88 }
 0x57d   :  { %888 = vsyncpa [#allocation4], 1 }
 0x57e   :  { %890 = vsyncpa [#allocation4 + $0x1], 1 }
 0x57f   :  { %891 = vsyncpa [#allocation7], 1 }
 0x580   :  { %892 = vsyncpa [#allocation5], 1 }
 0x581   :  { %894 = vsyncpa [#allocation5 + $0x1], 1 }

</bundles_post_ra>
